<compile_context>
chip_gen: v7x
topology: tpu7x:2x2x1
jax: 0.10.0
libtpu: 0.0.40
codegen_flags: <defaults>
</compile_context>

<pallas_src>
import functools

import numpy as np
import jax
import jax.numpy as jnp
from jax.experimental import pallas as pl
from jax.experimental.pallas import tpu as pltpu


def _round_up(n, m):
    return ((n + m - 1) // m) * m


def dlinear_kernel(w_ref, x_ref, o_ref):
    # w_ref: (P, T+1)   x_ref: (T+1, TN)   o_ref: (P, TN)
    # Bias is the last column of w_ref (ones row in x_ref) -> single MXU op.
    o_ref[...] = jnp.dot(
        w_ref[...], x_ref[...], preferred_element_type=jnp.float32
    ).astype(o_ref.dtype)


def make_effective_params(w_seasonal, b_seasonal, w_trend, b_trend, alpha,
                          seq_len, dtype=jnp.float32):
    """Fold EMA decomposition + both Linear layers into one (P, T+1) matrix.

    Folding is done in float64 on host so w_j/d_i stays well-conditioned even
    for long sequences where (1-alpha)^(T-1) underflows float32 (mirrors the
    PyTorch module doing the EMA arithmetic in double).  The last column holds
    the combined bias b_s + b_t.
    """
    t = seq_len
    powers = np.arange(t, dtype=np.float64)[::-1]
    w = np.power(1.0 - alpha, powers)
    d = w.copy()
    w[1:] = w[1:] * alpha
    L = np.tril(np.ones((t, t), dtype=np.float64))
    M = L * (w[None, :] / d[:, None])                   # (T, T) trend operator

    ws = np.asarray(w_seasonal, dtype=np.float64)
    wt = np.asarray(w_trend, dtype=np.float64)
    w_eff = ws + (wt - ws) @ M                          # (P, T)
    b_eff = (np.asarray(b_seasonal, np.float64)
             + np.asarray(b_trend, np.float64)).reshape(-1, 1)
    w_aug = np.concatenate([w_eff, b_eff], axis=1)      # (P, T+1)
    return jnp.asarray(w_aug, dtype=dtype)


@functools.partial(jax.jit, static_argnames=("tn",))
def dlinear_forward(x, w_aug, *, tn=2048):
    """x: (B, T, C) float32; w_aug: (P, T+1) folded weights (+bias column)."""
    B, T, C = x.shape
    P, T1 = w_aug.shape
    assert T1 == T + 1
    N = B * C
    cdtype = w_aug.dtype

    # time -> sublanes, batch*channels -> lanes; append a ones row so the bias
    # is folded into the matmul (no separate (P,1) broadcast in the kernel).
    x2d = jnp.transpose(x, (1, 0, 2)).reshape(T, N).astype(cdtype)
    x2d = jnp.concatenate([x2d, jnp.ones((1, N), cdtype)], axis=0)  # (T+1, N)

    # Lane tile: multiple of 128, clamped so tiny problems stay one tile.
    tile_n = _round_up(min(tn, _round_up(N, 128)), 128)
    n_pad = _round_up(N, tile_n)
    if n_pad != N:
        x2d = jnp.pad(x2d, ((0, 0), (0, n_pad - N)))    # padded lanes -> zeros

    grid = (n_pad // tile_n,)

    # Scoped-VMEM budget: resident weights + double-buffered x/out tiles.
    itemsize = np.dtype(cdtype).itemsize
    vmem_need = (2 * P * T1 * itemsize
                 + 2 * T1 * tile_n * itemsize
                 + 2 * P * tile_n * 4
                 + (1 << 20))
    vmem_limit = int(min(max(2 * vmem_need, 8 << 20), 96 << 20))

    out2d = pl.pallas_call(
        dlinear_kernel,
        out_shape=jax.ShapeDtypeStruct((P, n_pad), jnp.float32),
        grid=grid,
        in_specs=[
            pl.BlockSpec((P, T1), lambda j: (0, 0)),        # resident weights
            pl.BlockSpec((T1, tile_n), lambda j: (0, j)),   # streamed lane tile
        ],
        out_specs=pl.BlockSpec((P, tile_n), lambda j: (0, j)),
        compiler_params=pltpu.CompilerParams(
            dimension_semantics=("parallel",),              # v7x: 2 TCs split tiles
            vmem_limit_bytes=vmem_limit,
        ),
    )(w_aug, x2d)

    # [P, B*C] -> [B, P, C]  (stays inside the same jit -> single dispatch)
    return out2d[:, :N].reshape(P, B, C).transpose(1, 0, 2)


def reference_forward(x, w_s, b_s, w_t, b_t, alpha):
    """Pure numpy reference mirroring the PyTorch module (EMA in float64)."""
    x = np.asarray(x, dtype=np.float64)
    _, T, _ = x.shape
    powers = np.arange(T, dtype=np.float64)[::-1]
    w = np.power(1.0 - alpha, powers)
    d = w.copy()
    w[1:] = w[1:] * alpha
    trend = np.cumsum(x * w[None, :, None], axis=1) / d[None, :, None]
    seasonal = x - trend
    ws = np.asarray(w_s, np.float64)
    wt = np.asarray(w_t, np.float64)
    so = np.einsum("pt,btc->bpc", ws, seasonal) + np.asarray(b_s, np.float64)[None, :, None]
    to = np.einsum("pt,btc->bpc", wt, trend) + np.asarray(b_t, np.float64)[None, :, None]
    return (so + to).astype(np.float32)


if __name__ == "__main__":
    # configs: seq_len=8, pred_len=16, enc_in(channels)=4, moving_avg(alpha)=0.3,
    #          individual=False
    B, T, C, P = 2, 8, 4, 16
    alpha = 0.3

    key = jax.random.PRNGKey(0)
    kx, ks, kbs, kt, kbt, kx2 = jax.random.split(key, 6)

    x = jax.random.normal(kx, (B, T, C), dtype=jnp.float32)

    # nn.Linear(seq_len, pred_len) style init: uniform(-1/sqrt(T), 1/sqrt(T))
    bound = 1.0 / np.sqrt(T)
    w_seasonal = jax.random.uniform(ks, (P, T), jnp.float32, -bound, bound)
    b_seasonal = jax.random.uniform(kbs, (P,), jnp.float32, -bound, bound)
    w_trend = jax.random.uniform(kt, (P, T), jnp.float32, -bound, bound)
    b_trend = jax.random.uniform(kbt, (P,), jnp.float32, -bound, bound)

    w_np = (np.asarray(w_seasonal), np.asarray(b_seasonal),
            np.asarray(w_trend), np.asarray(b_trend))

    # --- f32 compute path (tight tolerance) ---
    w_aug_f32 = make_effective_params(*w_np, alpha, T, dtype=jnp.float32)
    out = jax.block_until_ready(dlinear_forward(x, w_aug_f32))
    ref = reference_forward(np.asarray(x), *w_np, alpha)
    np.testing.assert_allclose(np.asarray(out), ref, rtol=1e-5, atol=1e-5)
    assert out.shape == (B, P, C)

    # --- bf16 compute path (halved HBM traffic; f32 MXU accumulation) ---
    w_aug_bf16 = make_effective_params(*w_np, alpha, T, dtype=jnp.bfloat16)
    out_bf16 = jax.block_until_ready(dlinear_forward(x, w_aug_bf16))
    np.testing.assert_allclose(np.asarray(out_bf16), ref, rtol=5e-2, atol=5e-2)

    # --- exercise the multi-tile lane grid (N = B*C = 384, tn=128 -> grid=3) ---
    B2, C2 = 4, 96
    x2 = jax.random.normal(kx2, (B2, T, C2), dtype=jnp.float32)
    out2 = jax.block_until_ready(dlinear_forward(x2, w_aug_f32, tn=128))
    ref2 = reference_forward(np.asarray(x2), *w_np, alpha)
    np.testing.assert_allclose(np.asarray(out2), ref2, rtol=1e-5, atol=1e-5)
    assert out2.shape == (B2, P, C2)

    print("KERNEL_OK")
</pallas_src>

<mosaic_0001>
module attributes {stable_mosaic.version = 11 : i64} {
  func.func @dlinear_kernel(%arg0: i32, %arg1: memref<16x9xf32, #tpu.memory_space<vmem>>, %arg2: memref<9x128xf32, #tpu.memory_space<vmem>>, %arg3: memref<16x128xf32, #tpu.memory_space<vmem>>) attributes {dimension_semantics = [#tpu.dimension_semantics<parallel>], iteration_bounds = array<i64: 1>, scalar_prefetch = 0 : i64, scratch_operands = 0 : i64, tpu.core_type = #tpu.core_type<tc>, window_params = [{pipeline_mode = #tpu.pipeline_mode<synchronous>, transform_indices = @transform_0, window_bounds = array<i64: 16, 9>}, {transform_indices = @transform_1, window_bounds = array<i64: 9, 128>}, {transform_indices = @transform_2, window_bounds = array<i64: 16, 128>}]} {
    %c0 = arith.constant 0 : index
    %c0_0 = arith.constant 0 : index
    %0 = vector.load %arg1[%c0, %c0_0] : memref<16x9xf32, #tpu.memory_space<vmem>>, vector<16x9xf32>
    %c0_1 = arith.constant 0 : index
    %c0_2 = arith.constant 0 : index
    %1 = vector.load %arg2[%c0_1, %c0_2] : memref<9x128xf32, #tpu.memory_space<vmem>>, vector<9x128xf32>
    %cst = arith.constant dense<0.000000e+00> : vector<16x128xf32>
    %2 = tpu.matmul %0, %1, %cst {dimension_numbers = #tpu.dot_dimension_numbers<[1], [0], [0], [1], [0, 0, 1, 1], [], []>} : vector<16x9xf32>, vector<9x128xf32>, vector<16x128xf32> -> vector<16x128xf32>
    %c0_3 = arith.constant 0 : index
    %c0_4 = arith.constant 0 : index
    %3 = vector.load %arg3[%c0_3, %c0_4] : memref<16x128xf32, #tpu.memory_space<vmem>>, vector<16x128xf32>
    tpu.vector_store %arg3[%c0_3, %c0_4], %2 {strides = array<i32>} : memref<16x128xf32, #tpu.memory_space<vmem>>, vector<16x128xf32>,
    return
  }
  func.func @transform_0(%arg0: i32) -> (i32, i32) {
    %c0_i32 = arith.constant 0 : i32
    %c0_i32_0 = arith.constant 0 : i32
    %c0_i32_1 = arith.constant 0 : i32
    return %c0_i32, %c0_i32_0 : i32, i32
  }
  func.func @transform_1(%arg0: i32) -> (i32, i32) {
    %c0_i32 = arith.constant 0 : i32
    %c0_i32_0 = arith.constant 0 : i32
    return %c0_i32, %arg0 : i32, i32
  }
  func.func @transform_2(%arg0: i32) -> (i32, i32) {
    %c0_i32 = arith.constant 0 : i32
    %c0_i32_0 = arith.constant 0 : i32
    return %c0_i32, %arg0 : i32, i32
  }
}

</mosaic_0001>

<bundles_post_ra>
// kernel: dlinear_forward.1
= control target key start
LH: loop header
LB: loop body
LE: loop exit
PB: predicated region body
PF: predicated region fallthrough
CT: control target
= control target key end

     0   :  { %vm22_vm0 = vcmask 1040384   ;;  %vm15_vm1 = vcmask 72704   ;;  %vm128_vm2 = vmmov 1   ;;  %s162_s1 = inlined_call_operand.vmem [shape: f32[9,128], index: 1, kind: input, shape index: {}]   ;;  %s163_s0 = inlined_call_operand.vmem [shape: f32[16,9], index: 0, kind: input, shape index: {}]   ;;  %s164_s2 = inlined_call_operand.vmem [shape: f32[16,128], index: 2, kind: output, shape index: {}]  }
   0x1   :  { %v13_v0 = vld [vmem:[%s162_s1] sm:$0xff]  ;;  %v14_v1 = vld [vmem:[%s162_s1 + $0x8] sm:$0x1]  ;;  %vm122_vm3 = vmpackc.low %vm22_vm0, %vm128_vm2 }
   0x2   :  { %v121_v2 = vpack.c.bf16 %v14_v1, %v13_v0  ;;  %v11_v3 = vld [vmem:[%s163_s0] sm:$0xff]  ;;  %v12_v4 = vld [vmem:[%s163_s0 + $0x8] sm:$0xff] }
   0x3   :  { %118 = vmatprep.mubr.msk.f32.mxu0 %vm15_vm1, %v11_v3 }
   0x4   :  { %123 = vmatprep.subr.msk.bf16.mxu0 %vm122_vm3, %v121_v2 }
   0x5   :  { %126 = vmatpush3.bf16.msk.msra.mxu0 %vm122_vm3, %v121_v2 }
   0x8   :  { %119 = vmatmul.mubr.msk.f32.vlgmr.msra.gmra.mrb[0].mxu0 %vm15_vm1, %v12_v4 }
  0xdb   :  { %v120_v5 = vpop.f32.mrb[0].mxu0 }
  0xdc   :  { %102 = vst [vmem:[%s164_s2 + $0x8] sm:$0xff] %v120_v5  ;;  %v92_v6 = vpop.f32.mrb[1].mxu0 }
  0xdd   :  { %101 = vst [vmem:[%s164_s2] sm:$0xff] %v92_v6 }

</bundles_post_ra>
